<compile_context>
chip_gen: v7x
topology: tpu7x:2x2x1
jax: 0.10.0
libtpu: 0.0.40
codegen_flags: <defaults>
</compile_context>

<pallas_src>
import jax
import jax.numpy as jnp
from jax.experimental import pallas as pl
from jax.experimental.pallas import tpu as pltpu

_OUT_ROWS = 8  # pad the 2 output features to a full sublane group (unmasked vst)


def _leaky_relu(x, slope=0.2):
    # valid for slope < 1: max(x, slope*x) == leaky_relu(x); one vmul + vmax
    return jnp.maximum(x, slope * x)


def _round_up(x, m):
    return -(-x // m) * m


def decoder_fc_kernel(x_ref, w1t_ref, b1t_ref, w2t_ref, b2t_ref,
                      w34t_ref, b34t_ref, ot_ref):
    """Feature-major MLP: every ref is (feat, TB) with batch on the lane dim."""
    x = x_ref[...]                                                  # (D, TB)

    # Layer 1 + LeakyReLU:  h1[f, b] = sum_i W1[i, f] * x[i, b] + b1[f]
    h1 = jnp.dot(w1t_ref[...], x,
                 preferred_element_type=jnp.float32) + b1t_ref[...]  # (D, TB) f32
    h1 = _leaky_relu(h1).astype(x.dtype)                             # back to stream dtype

    # Layer 2 + LeakyReLU
    h2 = jnp.dot(w2t_ref[...], h1,
                 preferred_element_type=jnp.float32) + b2t_ref[...]  # (D/2, TB) f32
    h2 = _leaky_relu(h2).astype(x.dtype)

    # Folded layers 3+4 (no activation between them in the original module).
    out = jnp.dot(w34t_ref[...], h2,
                  preferred_element_type=jnp.float32) + b34t_ref[...]  # (8, TB)
    ot_ref[...] = out.astype(ot_ref.dtype)


def prepare_params(params, dh, ds, dz, act_dtype=jnp.bfloat16):
    """Wrapper-side precompute: transpose weights to feature-major, fold fc3+fc4,
    pad the tiny output head to 8 rows, cast weights to the streaming dtype."""
    (w1, b1), (w2, b2), (w3, b3), (w4, b4) = params
    D = w1.shape[0]
    assert dh + ds + dz == D, "h/s/z feature split must sum to hidden_dim"

    w1_t = w1.T.astype(act_dtype)                       # (D, D)
    b1_t = b1.reshape(-1, 1).astype(jnp.float32)        # (D, 1)
    w2_t = w2.T.astype(act_dtype)                       # (D/2, D)
    b2_t = b2.reshape(-1, 1).astype(jnp.float32)        # (D/2, 1)

    w34 = w3 @ w4                                       # (D/2, 2)   fold fc3@fc4
    b34 = b3 @ w4 + b4                                  # (1, 2)
    w34_t = jnp.zeros((_OUT_ROWS, D // 2), jnp.float32).at[:2].set(w34.T)
    b34_t = jnp.zeros((_OUT_ROWS, 1), jnp.float32).at[:2].set(b34.T)
    return (w1_t, b1_t, w2_t, b2_t, w34_t.astype(act_dtype), b34_t)


def decoder_fc_forward(h, s, z, prepared, *, max_tb=4096):
    """h, s, z: [B, *] float32 with feature dims summing to hidden_dim."""
    w1_t, b1_t, w2_t, b2_t, w34_t, b34_t = prepared
    act_dtype = w1_t.dtype
    B = h.shape[0]
    D = w1_t.shape[0]

    # Wrapper-side concat + transpose + cast fuse into one cheap XLA op and
    # present a feature-major (D, B) slab with the batch on the lane dim.
    x_t = jnp.concatenate([h, s, z], axis=1).T.astype(act_dtype)     # (D, B)

    # Batch tiling: one full block for small B; for large B pick a 128-multiple
    # tile that yields >=2 grid steps so ("parallel",) can shard across v7x TCs.
    if B <= 512:
        tb, bp = B, B
    else:
        assert max_tb % 128 == 0, "max_tb must be a multiple of 128"
        tb = min(max_tb, _round_up(pl.cdiv(B, 2), 128))
        bp = _round_up(B, tb)
        if bp != B:
            x_t = jnp.pad(x_t, ((0, 0), (0, bp - B)))
    grid = (bp // tb,)

    def resident_spec(shape):
        # full-array block, constant index -> stays VMEM-resident across steps
        return pl.BlockSpec(shape, lambda i: (0,) * len(shape))

    out_t = pl.pallas_call(
        decoder_fc_kernel,
        out_shape=jax.ShapeDtypeStruct((_OUT_ROWS, bp), jnp.float32),
        grid=grid,
        in_specs=[pl.BlockSpec((D, tb), lambda i: (0, i)),
                  resident_spec(w1_t.shape), resident_spec(b1_t.shape),
                  resident_spec(w2_t.shape), resident_spec(b2_t.shape),
                  resident_spec(w34_t.shape), resident_spec(b34_t.shape)],
        out_specs=pl.BlockSpec((_OUT_ROWS, tb), lambda i: (0, i)),
        compiler_params=pltpu.CompilerParams(
            dimension_semantics=("parallel",)),
    )(x_t, w1_t, b1_t, w2_t, b2_t, w34_t, b34_t)

    return out_t[:2, :B].T                                           # (B, 2)


def init_params(key, hidden_dim):
    """torch.nn.Linear(in, out) has W: [out, in], b: [out]; we store W
    transposed ([in, out]) and b as [1, out]."""
    dims = [(hidden_dim, hidden_dim),
            (hidden_dim, hidden_dim // 2),
            (hidden_dim // 2, hidden_dim // 4),
            (hidden_dim // 4, 2)]
    params = []
    for (d_in, d_out) in dims:
        key, kw, kb = jax.random.split(key, 3)
        bound = 1.0 / jnp.sqrt(d_in)
        w_t = jax.random.uniform(kw, (d_in, d_out), jnp.float32, -bound, bound)
        b = jax.random.uniform(kb, (1, d_out), jnp.float32, -bound, bound)
        params.append((w_t, b))
    return params


def reference_forward(h, s, z, params):
    """Pure-JAX reference (mirrors the PyTorch Sequential exactly)."""
    x = jnp.concatenate([h, s, z], axis=1)
    (w1, b1), (w2, b2), (w3, b3), (w4, b4) = params
    x = jax.nn.leaky_relu(x @ w1 + b1, 0.2)
    x = jax.nn.leaky_relu(x @ w2 + b2, 0.2)
    x = x @ w3 + b3
    x = x @ w4 + b4
    return x


if __name__ == "__main__":
    hidden_dim = 32
    dh, ds, dz = 16, 8, 8
    key = jax.random.PRNGKey(0)
    params = init_params(key, hidden_dim)

    # --- small test (B=2), f32 streaming, tight tolerance, grid=(1,) ---
    key, kh, ks, kz = jax.random.split(key, 4)
    B = 2
    h = jax.random.normal(kh, (B, dh), jnp.float32)
    s = jax.random.normal(ks, (B, ds), jnp.float32)
    z = jax.random.normal(kz, (B, dz), jnp.float32)

    prepared_f32 = prepare_params(params, dh, ds, dz, act_dtype=jnp.float32)
    out = jax.block_until_ready(decoder_fc_forward(h, s, z, prepared_f32))
    ref = reference_forward(h, s, z, params)
    assert out.shape == (B, 2)
    assert jnp.allclose(out, ref, atol=1e-4, rtol=1e-4)

    # --- larger test: bf16 streaming, batch-tiled path (grid=(2,)) ---
    key, k2h, k2s, k2z = jax.random.split(key, 4)
    B2 = 2048
    h2 = jax.random.normal(k2h, (B2, dh), jnp.float32)
    s2 = jax.random.normal(k2s, (B2, ds), jnp.float32)
    z2 = jax.random.normal(k2z, (B2, dz), jnp.float32)

    prepared_bf16 = prepare_params(params, dh, ds, dz, act_dtype=jnp.bfloat16)
    out2 = jax.block_until_ready(
        decoder_fc_forward(h2, s2, z2, prepared_bf16, max_tb=1024))
    ref2 = reference_forward(h2, s2, z2, params)
    assert out2.shape == (B2, 2)
    # bf16 streaming loosens numerics; accumulation stays f32.
    assert jnp.allclose(out2, ref2, atol=5e-2, rtol=5e-2)

    print("KERNEL_OK")
</pallas_src>

<mosaic_0001>
module attributes {stable_mosaic.version = 11 : i64} {
  func.func @decoder_fc_kernel(%arg0: i32, %arg1: memref<32x2xf32, #tpu.memory_space<vmem>>, %arg2: memref<32x32xf32, #tpu.memory_space<vmem>>, %arg3: memref<32x1xf32, #tpu.memory_space<vmem>>, %arg4: memref<16x32xf32, #tpu.memory_space<vmem>>, %arg5: memref<16x1xf32, #tpu.memory_space<vmem>>, %arg6: memref<8x16xf32, #tpu.memory_space<vmem>>, %arg7: memref<8x1xf32, #tpu.memory_space<vmem>>, %arg8: memref<8x2xf32, #tpu.memory_space<vmem>>) attributes {dimension_semantics = [#tpu.dimension_semantics<parallel>], iteration_bounds = array<i64: 1>, scalar_prefetch = 0 : i64, scratch_operands = 0 : i64, tpu.core_type = #tpu.core_type<tc>, window_params = [{transform_indices = @transform_0, window_bounds = array<i64: 32, 2>}, {pipeline_mode = #tpu.pipeline_mode<synchronous>, transform_indices = @transform_1, window_bounds = array<i64: 32, 32>}, {pipeline_mode = #tpu.pipeline_mode<synchronous>, transform_indices = @transform_2, window_bounds = array<i64: 32, 1>}, {pipeline_mode = #tpu.pipeline_mode<synchronous>, transform_indices = @transform_3, window_bounds = array<i64: 16, 32>}, {pipeline_mode = #tpu.pipeline_mode<synchronous>, transform_indices = @transform_4, window_bounds = array<i64: 16, 1>}, {pipeline_mode = #tpu.pipeline_mode<synchronous>, transform_indices = @transform_5, window_bounds = array<i64: 8, 16>}, {pipeline_mode = #tpu.pipeline_mode<synchronous>, transform_indices = @transform_6, window_bounds = array<i64: 8, 1>}, {transform_indices = @transform_7, window_bounds = array<i64: 8, 2>}]} {
    %c0 = arith.constant 0 : index
    %c0_0 = arith.constant 0 : index
    %0 = vector.load %arg1[%c0, %c0_0] : memref<32x2xf32, #tpu.memory_space<vmem>>, vector<32x2xf32>
    %c0_1 = arith.constant 0 : index
    %c0_2 = arith.constant 0 : index
    %1 = vector.load %arg2[%c0_1, %c0_2] : memref<32x32xf32, #tpu.memory_space<vmem>>, vector<32x32xf32>
    %cst = arith.constant dense<0.000000e+00> : vector<32x2xf32>
    %2 = tpu.matmul %1, %0, %cst {dimension_numbers = #tpu.dot_dimension_numbers<[1], [0], [0], [1], [0, 0, 1, 1], [], []>} : vector<32x32xf32>, vector<32x2xf32>, vector<32x2xf32> -> vector<32x2xf32>
    %c0_3 = arith.constant 0 : index
    %c0_4 = arith.constant 0 : index
    %3 = vector.load %arg3[%c0_3, %c0_4] : memref<32x1xf32, #tpu.memory_space<vmem>>, vector<32x1xf32>
    %4 = vector.broadcast %3 : vector<32x1xf32> to vector<32x2xf32>
    %5 = arith.addf %2, %4 : vector<32x2xf32>
    %cst_5 = arith.constant 2.000000e-01 : f32
    %6 = vector.broadcast %cst_5 : f32 to vector<32x2xf32>
    %7 = arith.mulf %6, %5 : vector<32x2xf32>
    %8 = arith.maximumf %5, %7 : vector<32x2xf32>
    %c0_6 = arith.constant 0 : index
    %c0_7 = arith.constant 0 : index
    %9 = vector.load %arg4[%c0_6, %c0_7] : memref<16x32xf32, #tpu.memory_space<vmem>>, vector<16x32xf32>
    %cst_8 = arith.constant dense<0.000000e+00> : vector<16x2xf32>
    %10 = tpu.matmul %9, %8, %cst_8 {dimension_numbers = #tpu.dot_dimension_numbers<[1], [0], [0], [1], [0, 0, 1, 1], [], []>} : vector<16x32xf32>, vector<32x2xf32>, vector<16x2xf32> -> vector<16x2xf32>
    %c0_9 = arith.constant 0 : index
    %c0_10 = arith.constant 0 : index
    %11 = vector.load %arg5[%c0_9, %c0_10] : memref<16x1xf32, #tpu.memory_space<vmem>>, vector<16x1xf32>
    %12 = vector.broadcast %11 : vector<16x1xf32> to vector<16x2xf32>
    %13 = arith.addf %10, %12 : vector<16x2xf32>
    %cst_11 = arith.constant 2.000000e-01 : f32
    %14 = vector.broadcast %cst_11 : f32 to vector<16x2xf32>
    %15 = arith.mulf %14, %13 : vector<16x2xf32>
    %16 = arith.maximumf %13, %15 : vector<16x2xf32>
    %c0_12 = arith.constant 0 : index
    %c0_13 = arith.constant 0 : index
    %17 = vector.load %arg6[%c0_12, %c0_13] : memref<8x16xf32, #tpu.memory_space<vmem>>, vector<8x16xf32>
    %cst_14 = arith.constant dense<0.000000e+00> : vector<8x2xf32>
    %18 = tpu.matmul %17, %16, %cst_14 {dimension_numbers = #tpu.dot_dimension_numbers<[1], [0], [0], [1], [0, 0, 1, 1], [], []>} : vector<8x16xf32>, vector<16x2xf32>, vector<8x2xf32> -> vector<8x2xf32>
    %c0_15 = arith.constant 0 : index
    %c0_16 = arith.constant 0 : index
    %19 = vector.load %arg7[%c0_15, %c0_16] : memref<8x1xf32, #tpu.memory_space<vmem>>, vector<8x1xf32>
    %20 = vector.broadcast %19 : vector<8x1xf32> to vector<8x2xf32>
    %21 = arith.addf %18, %20 : vector<8x2xf32>
    %c0_17 = arith.constant 0 : index
    %c0_18 = arith.constant 0 : index
    %22 = vector.load %arg8[%c0_17, %c0_18] : memref<8x2xf32, #tpu.memory_space<vmem>>, vector<8x2xf32>
    tpu.vector_store %arg8[%c0_17, %c0_18], %21 {strides = array<i32>} : memref<8x2xf32, #tpu.memory_space<vmem>>, vector<8x2xf32>,
    return
  }
  func.func @transform_0(%arg0: i32) -> (i32, i32) {
    %c0_i32 = arith.constant 0 : i32
    %c0_i32_0 = arith.constant 0 : i32
    return %c0_i32, %arg0 : i32, i32
  }
  func.func @transform_1(%arg0: i32) -> (i32, i32) {
    %c0_i32 = arith.constant 0 : i32
    %c0_i32_0 = arith.constant 0 : i32
    %c0_i32_1 = arith.constant 0 : i32
    return %c0_i32, %c0_i32_0 : i32, i32
  }
  func.func @transform_2(%arg0: i32) -> (i32, i32) {
    %c0_i32 = arith.constant 0 : i32
    %c0_i32_0 = arith.constant 0 : i32
    %c0_i32_1 = arith.constant 0 : i32
    return %c0_i32, %c0_i32_0 : i32, i32
  }
  func.func @transform_3(%arg0: i32) -> (i32, i32) {
    %c0_i32 = arith.constant 0 : i32
    %c0_i32_0 = arith.constant 0 : i32
    %c0_i32_1 = arith.constant 0 : i32
    return %c0_i32, %c0_i32_0 : i32, i32
  }
  func.func @transform_4(%arg0: i32) -> (i32, i32) {
    %c0_i32 = arith.constant 0 : i32
    %c0_i32_0 = arith.constant 0 : i32
    %c0_i32_1 = arith.constant 0 : i32
    return %c0_i32, %c0_i32_0 : i32, i32
  }
  func.func @transform_5(%arg0: i32) -> (i32, i32) {
    %c0_i32 = arith.constant 0 : i32
    %c0_i32_0 = arith.constant 0 : i32
    %c0_i32_1 = arith.constant 0 : i32
    return %c0_i32, %c0_i32_0 : i32, i32
  }
  func.func @transform_6(%arg0: i32) -> (i32, i32) {
    %c0_i32 = arith.constant 0 : i32
    %c0_i32_0 = arith.constant 0 : i32
    %c0_i32_1 = arith.constant 0 : i32
    return %c0_i32, %c0_i32_0 : i32, i32
  }
  func.func @transform_7(%arg0: i32) -> (i32, i32) {
    %c0_i32 = arith.constant 0 : i32
    %c0_i32_0 = arith.constant 0 : i32
    return %c0_i32, %arg0 : i32, i32
  }
}

</mosaic_0001>

<bundles_post_ra>
// kernel: tpu_custom_call.1
= control target key start
LH: loop header
LB: loop body
LE: loop exit
PB: predicated region body
PF: predicated region fallthrough
CT: control target
= control target key end

     0   :  { %vm58_vm0 = vcmask 261120   ;;  %v431_v3 = vmov 0   ;;  %v432_v42 = vmov 0.0|0.0   ;;  %vm433_vm1 = vmmov 0   ;;  %s538_s0 = inlined_call_operand.vmem [shape: f32[32,2], index: 0, kind: input, shape index: {}]   ;;  %s539_s1 = inlined_call_operand.vmem [shape: f32[32,32], index: 1, kind: input, shape index: {}]   ;;  %s540_s2 = inlined_call_operand.vmem [shape: f32[32,1], index: 2, kind: input, shape index: {}]   ;;  %s541_s4 = inlined_call_operand.vmem [shape: f32[16,1], index: 4, kind: input, shape index: {}]   ;;  %s542_s6 = inlined_call_operand.vmem [shape: f32[8,1], index: 6, kind: input, shape index: {}]   ;;  %s543_s3 = inlined_call_operand.vmem [shape: f32[16,32], index: 3, kind: input, shape index: {}]   ;;  %s544_s5 = inlined_call_operand.vmem [shape: f32[8,16], index: 5, kind: input, shape index: {}]   ;;  %s545_s7 = inlined_call_operand.vmem [shape: f32[8,2], index: 7, kind: output, shape index: {}]  }
   0x1   :  { %v26_v0 = vld [vmem:[%s538_s0] sm:$0xff]  ;;  %v27_v1 = vld [vmem:[%s538_s0 + $0x8] sm:$0xff]  ;;  %v28_v2 = vld [vmem:[%s538_s0 + $0x10] sm:$0xff]  ;;  %429 = vset.pattern.permute.xlu0 %v431_v3  ;;  %430 = vset.pattern.permute.xlu1 %v431_v3  ;;  %v434_v43 = vmov 0.0   ;;  %vm270_vm2 = vcmask 130048   ;;  %vm344_vm3 = vcmask 15360  }
   0x2   :  { %v406_v4 = vpack.c.bf16 %v27_v1, %v26_v0  ;;  %v29_v5 = vld [vmem:[%s538_s0 + $0x18] sm:$0xff]  ;;  %v30_v6 = vld [vmem:[%s539_s1] sm:$0xff]  ;;  %v36_v9 = vld [vmem:[%s540_s2 + $0x10] sm:$0xff] }
   0x3   :  { %v410_v7 = vpack.c.bf16 %v29_v5, %v28_v2  ;;  %382 = vmatprep.mubr.msk.f32.mxu0 %vm58_vm0, %v30_v6  ;;  %v34_v8 = vld [vmem:[%s540_s2] sm:$0xff]  ;;  %v35_v10 = vld [vmem:[%s540_s2 + $0x8] sm:$0xff]  ;;  %50 = vperm.xlu1 %430, %v36_v9   ;;  %v37_v11 = vld [vmem:[%s540_s2 + $0x18] sm:$0xff] }
   0x4   :  { %407 = vmatprep.subr.bf16.mxu0 %v406_v4  ;;  %40 = vperm.xlu0 %429, %v34_v8   ;;  %v31_v12 = vld [vmem:[%s539_s1 + $0x8] sm:$0xff]  ;;  %v166_v13 = vld [vmem:[%s541_s4] sm:$0xff]  ;;  %v32_v14 = vld [vmem:[%s539_s1 + $0x10] sm:$0xff] }
   0x5   :  { %409 = vmatpush3.bf16.msra.mxu0 %v406_v4  ;;  %v167_v15 = vld [vmem:[%s541_s4 + $0x8] sm:$0xff]  ;;  %v33_v16 = vld [vmem:[%s539_s1 + $0x18] sm:$0xff]  ;;  %v264_v17 = vld [vmem:[%s542_s6] sm:$0xff] }
   0x6   :  { %411 = vmatprep.subr.bf16.mxu0 %v410_v7  ;;  %v164_v18 = vld [vmem:[%s543_s3] sm:$0xff]  ;;  %v165_v41 = vld [vmem:[%s543_s3 + $0x8] sm:$0xff] }
   0x7   :  { %55 = vperm.xlu1 %430, %v37_v11   ;;  %396 = vmatprep.mubr.msk.f32.mxu1 %vm58_vm0, %v164_v18  ;;  %v263_v55 = vld [vmem:[%s544_s5] sm:$0xff] }
   0x8   :  { %45 = vperm.xlu0 %429, %v35_v10  }
   0x9   :  { %413 = vmatpush3.bf16.msra.mxu0 %v410_v7 }
   0xb   :  { %175 = vperm.xlu1 %430, %v167_v15  }
   0xc   :  { %383 = vmatmul.mubr.msk.f32.vlgmr.msra.gmra.mrb[0].mxu0 %vm58_vm0, %v31_v12  ;;  %170 = vperm.xlu0 %429, %v166_v13  }
   0xd   :  { %385 = vmatprep.mubr.msk.f32.mxu0 %vm58_vm0, %v32_v14 }
  0x10   :  { %386 = vmatmul.mubr.msk.f32.gmra.mrb[2].mxu0 %vm58_vm0, %v33_v16  ;;  %267 = vperm.xlu0 %429, %v264_v17  }
  0x82   :  { %v51_v20 = vpop.permute.xlu1 %50 }
  0x83   :  { %v41_v19 = vpop.permute.xlu0 %40 }
  0x86   :  { %v56_v27 = vpop.permute.xlu1 %55 }
  0x87   :  { %v46_v21 = vpop.permute.xlu0 %45 }
  0x8a   :  { %v176_v44 = vpop.permute.xlu1 %175 }
  0x8b   :  { %v171_v46 = vpop.permute.xlu0 %170 }
  0x8f   :  { %v268_v56 = vpop.permute.xlu0 %267 }
  0xdf   :  { %v384_v22 = vpop.f32.mrb[0].mxu0 }
  0xe0   :  { %v143_v23 = vadd.f32 %v384_v22, %v46_v21  ;;  %v137_v24 = vpop.f32.mrb[1].mxu0 }
  0xe1   :  { %v138_v25 = vadd.f32 %v137_v24, %v41_v19 }
  0xe2   :  { %v157_v26 = vmul.f32 0.2, %v143_v23 }
  0xe3   :  { %v156_v28 = vmul.f32 0.2, %v138_v25  ;;  %v387_v29 = vpop.f32.mrb[2].mxu0 }
  0xe4   :  { %v161_v30 = vmax.f32 %v143_v23, %v157_v26  ;;  %v153_v31 = vadd.f32 %v387_v29, %v56_v27  ;;  %v147_v32 = vpop.f32.mrb[3].mxu0 }
  0xe5   :  { %v160_v33 = vmax.f32 %v138_v25, %v156_v28  ;;  %v148_v34 = vadd.f32 %v147_v32, %v51_v20 }
  0xe6   :  { %v159_v35 = vmul.f32 0.2, %v153_v31 }
  0xe7   :  { %v158_v36 = vmul.f32 0.2, %v148_v34  ;;  %v414_v37 = vpack.c.bf16 %v161_v30, %v160_v33 }
  0xe8   :  { %v163_v38 = vmax.f32 %v153_v31, %v159_v35 }
  0xe9   :  { %v162_v39 = vmax.f32 %v148_v34, %v158_v36  ;;  %415 = vmatprep.subr.bf16.mxu1 %v414_v37 }
  0xea   :  { %417 = vmatpush3.bf16.msra.mxu1 %v414_v37 }
  0xeb   :  { %v418_v40 = vpack.c.bf16 %v163_v38, %v162_v39 }
  0xed   :  { %419 = vmatprep.subr.bf16.mxu1 %v418_v40 }
  0xee   :  { %421 = vmatpush3.bf16.msra.mxu1 %v418_v40 }
  0xef   :  { %422 = vmatprep.subr.bf16.mxu1 %v432_v42 }
  0xf1   :  { %397 = vmatmul.mubr.msk.f32.vlgmr.msra.gmra.mrb[0].mxu1 %vm58_vm0, %v165_v41 }
  0xf2   :  { %403 = vmatprep.mubr.msk.f32.mxu1 %vm433_vm1, %v434_v43 }
 0x1c4   :  { %v398_v45 = vpop.f32.mrb[0].mxu1 }
 0x1c5   :  { %v256_v47 = vadd.f32 %v398_v45, %v176_v44  ;;  %v250_v48 = vpop.f32.mrb[1].mxu1 }
 0x1c6   :  { %v251_v49 = vadd.f32 %v250_v48, %v171_v46 }
 0x1c7   :  { %v260_v50 = vmul.f32 0.2, %v256_v47 }
 0x1c8   :  { %v259_v51 = vmul.f32 0.2, %v251_v49 }
 0x1c9   :  { %v262_v52 = vmax.f32 %v256_v47, %v260_v50 }
 0x1ca   :  { %v261_v53 = vmax.f32 %v251_v49, %v259_v51 }
 0x1cc   :  { %v423_v54 = vpack.c.bf16 %v262_v52, %v261_v53 }
 0x1ce   :  { %424 = vmatpush3.bf16.msra.mxu1 %v423_v54 }
 0x1d1   :  { %404 = vmatmul.mubr.msk.f32.vlgmr.msra.gmra.mrb[2].mxu1 %vm270_vm2, %v263_v55 }
 0x2a4   :  { %v340_v57 = vpop.f32.mrb[2].mxu1 }
 0x2a5   :  { %v341_v58 = vadd.f32 %v340_v57, %v268_v56  ;;  %v405_v59 = vpop.f32.mrb[3].mxu1 }
 0x2a7   :  { %345 = vst.msk [vmem:[%s545_s7] sm:$0xff] %vm344_vm3, %v341_v58 }

</bundles_post_ra>
